<compile_context>
chip_gen: v6e
topology: v6e:2x2x1
jax: 0.10.0
libtpu: 0.0.40
codegen_flags: <defaults>
</compile_context>

<pallas_src>
import jax
import jax.numpy as jnp
from jax import lax
from jax.experimental import pallas as pl
from jax.experimental.pallas import tpu as pltpu

DROPOUT_P = 0.2
# keep an element iff its uniform uint32 draw >= p * 2^32   (P(keep) = 1 - p)
_DROPOUT_THRESHOLD = int(DROPOUT_P * (1 << 32))          # 858993459
_KEEP_SCALE = 1.0 / (1.0 - DROPOUT_P)


def _sdpa_dropout_kernel(q_ref, k_ref, v_ref, bits_ref, o_ref):
    # Whole problem in one grid step: refs are (BH, S, Dp) / (BH, S, S).
    q = q_ref[...]                     # keep native dtype (bf16 stays bf16 on the MXU)
    k = k_ref[...]
    v = v_ref[...]

    # v1 = query @ key^T — contract on D of both operands (no XLU transpose of K).
    s = lax.dot_general(
        q, k,
        dimension_numbers=(((2,), (2,)), ((0,), (0,))),
        preferred_element_type=jnp.float32,
    )                                  # (BH, S, S) f32
    s = s * 1.0                        # v2 = v1 * 1   (parity with the torch module)

    # v3 = softmax(v1, dim=-1)
    m = jnp.max(s, axis=-1, keepdims=True)
    e = jnp.exp(s - m)
    p = e / jnp.sum(e, axis=-1, keepdims=True)

    # v4 = F.dropout(v3, p=0.2)  — training semantics: zero w.p. p, scale by 1/(1-p).
    keep = bits_ref[...] >= jnp.uint32(_DROPOUT_THRESHOLD)
    p = p * jnp.where(keep, jnp.float32(_KEEP_SCALE), jnp.float32(0.0))

    # v5 = v4 @ value — batched contraction over the key axis.
    o = lax.dot_general(
        p.astype(v.dtype), v,
        dimension_numbers=(((2,), (1,)), ((0,), (0,))),
        preferred_element_type=jnp.float32,
    )                                  # (BH, S, Dp)
    o_ref[...] = o.astype(o_ref.dtype)


def _pad_last_to(x, multiple):
    pad = (-x.shape[-1]) % multiple
    if pad == 0:
        return x
    return jnp.pad(x, [(0, 0)] * (x.ndim - 1) + [(0, pad)])


@jax.jit
def sdpa_dropout(query, key, value, seed):
    B, H, S, D = query.shape
    BH = B * H

    # Lane-dense layout: pad head_dim up to a multiple of 128 so the output store is a
    # full-width (unmasked) vector store; zero-padding the contraction/output D axis does
    # not change the math. Sliced back after the call.
    q = _pad_last_to(query.reshape(BH, S, D), 128)
    k = _pad_last_to(key.reshape(BH, S, D), 128)
    v = _pad_last_to(value.reshape(BH, S, D), 128)
    Dp = q.shape[-1]

    # Traced seed (no recompile per seed). Bits drawn with the portable JAX PRNG.
    # TODO(synk): mask will not match PyTorch's dropout RNG bit-for-bit (different PRNG).
    bits = jax.random.bits(jax.random.PRNGKey(seed), (BH, S, S), dtype=jnp.uint32)

    vmem = pltpu.MemorySpace.VMEM
    out = pl.pallas_call(
        _sdpa_dropout_kernel,
        out_shape=jax.ShapeDtypeStruct((BH, S, Dp), query.dtype),
        in_specs=[
            pl.BlockSpec(memory_space=vmem),   # q
            pl.BlockSpec(memory_space=vmem),   # k
            pl.BlockSpec(memory_space=vmem),   # v
            pl.BlockSpec(memory_space=vmem),   # dropout bits
        ],
        out_specs=pl.BlockSpec(memory_space=vmem),
    )(q, k, v, bits)

    return out[:, :, :D].reshape(B, H, S, D)


if __name__ == "__main__":
    # Shapes match the torch example: query/key/value of shape (1, 3, 10, 10).
    rng = jax.random.PRNGKey(0)
    kq, kk, kv = jax.random.split(rng, 3)
    query = jax.random.normal(kq, (1, 3, 10, 10), dtype=jnp.float32)
    key = jax.random.normal(kk, (1, 3, 10, 10), dtype=jnp.float32)
    value = jax.random.normal(kv, (1, 3, 10, 10), dtype=jnp.float32)

    out = sdpa_dropout(query, key, value, 0)
    jax.block_until_ready(out)
    assert out.shape == (1, 3, 10, 10)
    assert bool(jnp.all(jnp.isfinite(out)))
    print("KERNEL_OK")
</pallas_src>

<mosaic_0001>
module attributes {stable_mosaic.version = 11 : i64} {
  func.func @_sdpa_dropout_kernel(%arg0: memref<3x10x128xf32, #tpu.memory_space<vmem>>, %arg1: memref<3x10x128xf32, #tpu.memory_space<vmem>>, %arg2: memref<3x10x128xf32, #tpu.memory_space<vmem>>, %arg3: memref<3x10x10xi32, #tpu.memory_space<vmem>>, %arg4: memref<3x10x128xf32, #tpu.memory_space<vmem>>) attributes {dimension_semantics = [], scalar_prefetch = 0 : i64, scratch_operands = 0 : i64, tpu.core_type = #tpu.core_type<tc>} {
    %c0 = arith.constant 0 : index
    %c0_0 = arith.constant 0 : index
    %c0_1 = arith.constant 0 : index
    %0 = vector.load %arg0[%c0, %c0_0, %c0_1] : memref<3x10x128xf32, #tpu.memory_space<vmem>>, vector<3x10x128xf32>
    %c0_2 = arith.constant 0 : index
    %c0_3 = arith.constant 0 : index
    %c0_4 = arith.constant 0 : index
    %1 = vector.load %arg1[%c0_2, %c0_3, %c0_4] : memref<3x10x128xf32, #tpu.memory_space<vmem>>, vector<3x10x128xf32>
    %c0_5 = arith.constant 0 : index
    %c0_6 = arith.constant 0 : index
    %c0_7 = arith.constant 0 : index
    %2 = vector.load %arg2[%c0_5, %c0_6, %c0_7] : memref<3x10x128xf32, #tpu.memory_space<vmem>>, vector<3x10x128xf32>
    %cst = arith.constant dense<0.000000e+00> : vector<3x10x10xf32>
    %3 = tpu.matmul %0, %1, %cst {dimension_numbers = #tpu.dot_dimension_numbers<[2], [2], [1], [1], [0, 0, 0, 1, 1, 1], [0], [0]>} : vector<3x10x128xf32>, vector<3x10x128xf32>, vector<3x10x10xf32> -> vector<3x10x10xf32>
    %cst_8 = arith.constant 1.000000e+00 : f32
    %4 = vector.broadcast %cst_8 : f32 to vector<3x10x10xf32>
    %5 = arith.mulf %3, %4 : vector<3x10x10xf32>
    %cst_9 = arith.constant dense<0xFF800000> : vector<3x10xf32>
    %6 = vector.multi_reduction <maximumf>, %5, %cst_9 [2] : vector<3x10x10xf32> to vector<3x10xf32>
    %7 = vector.shape_cast %6 : vector<3x10xf32> to vector<3x10x1xf32>
    %8 = vector.broadcast %7 : vector<3x10x1xf32> to vector<3x10x10xf32>
    %9 = arith.subf %5, %8 : vector<3x10x10xf32>
    %10 = math.exp %9 : vector<3x10x10xf32>
    %cst_10 = arith.constant dense<0.000000e+00> : vector<3x10xf32>
    %11 = vector.multi_reduction <add>, %10, %cst_10 [2] : vector<3x10x10xf32> to vector<3x10xf32>
    %12 = vector.shape_cast %11 : vector<3x10xf32> to vector<3x10x1xf32>
    %13 = vector.broadcast %12 : vector<3x10x1xf32> to vector<3x10x10xf32>
    %14 = arith.divf %10, %13 : vector<3x10x10xf32>
    %c0_11 = arith.constant 0 : index
    %c0_12 = arith.constant 0 : index
    %c0_13 = arith.constant 0 : index
    %15 = vector.load %arg3[%c0_11, %c0_12, %c0_13] : memref<3x10x10xi32, #tpu.memory_space<vmem>>, vector<3x10x10xi32>
    %c858993459_i32 = arith.constant 858993459 : i32
    %16 = vector.broadcast %c858993459_i32 : i32 to vector<3x10x10xi32>
    %17 = arith.cmpi uge, %15, %16 : vector<3x10x10xi32>
    %cst_14 = arith.constant 1.250000e+00 : f32
    %cst_15 = arith.constant 0.000000e+00 : f32
    %18 = vector.broadcast %cst_14 : f32 to vector<3x10x10xf32>
    %19 = vector.broadcast %cst_15 : f32 to vector<3x10x10xf32>
    %20 = arith.select %17, %18, %19 : vector<3x10x10xi1>, vector<3x10x10xf32>
    %21 = arith.mulf %14, %20 : vector<3x10x10xf32>
    %cst_16 = arith.constant dense<0.000000e+00> : vector<3x10x128xf32>
    %22 = tpu.matmul %21, %2, %cst_16 {dimension_numbers = #tpu.dot_dimension_numbers<[2], [1], [1], [2], [0, 0, 0, 1, 1, 2], [0], [0]>} : vector<3x10x10xf32>, vector<3x10x128xf32>, vector<3x10x128xf32> -> vector<3x10x128xf32>
    %c0_17 = arith.constant 0 : index
    %c0_18 = arith.constant 0 : index
    %c0_19 = arith.constant 0 : index
    %23 = vector.load %arg4[%c0_17, %c0_18, %c0_19] : memref<3x10x128xf32, #tpu.memory_space<vmem>>, vector<3x10x128xf32>
    tpu.vector_store %arg4[%c0_17, %c0_18, %c0_19], %22 {strides = array<i32>} : memref<3x10x128xf32, #tpu.memory_space<vmem>>, vector<3x10x128xf32>,
    return
  }
}

</mosaic_0001>

<bundles_post_ra>
// kernel: sdpa_dropout.1
= control target key start
LH: loop header
LB: loop body
LE: loop exit
PB: predicated region body
PF: predicated region fallthrough
CT: control target
= control target key end

     0   :  { %vm260_vm0 = vcmask 80896   ;;  %vm264_vm1 = vcmask 74752   ;;  %vm358_vm2 = vcmask 1041408   ;;  %s871_s1 = inlined_call_operand.vmem [shape: f32[3,10,128], index: 1, kind: input, shape index: {}]   ;;  %s872_s0 = inlined_call_operand.vmem [shape: f32[3,10,128], index: 0, kind: input, shape index: {}]   ;;  %s873_s2 = inlined_call_operand.vmem [shape: f32[3,10,128], index: 2, kind: input, shape index: {}]   ;;  %s874_s3 = inlined_call_operand.vmem [shape: u32[3,10,10], index: 3, kind: input, shape index: {}]   ;;  %s875_s4 = inlined_call_operand.vmem [shape: f32[3,10,128], index: 4, kind: output, shape index: {}]  }
   0x1   :  { %v24_v0 = vld [vmem:[%s871_s1 + $0x8] sm:$0x3]  ;;  %v26_v1 = vld [vmem:[%s871_s1 + $0x18] sm:$0x3]  ;;  %v23_v2 = vld [vmem:[%s871_s1] sm:$0xff] }
   0x2   :  { %648 = vmatprep.subr.mxu0 %v24_v0  ;;  %655 = vmatprep.subr.mxu1 %v26_v1  ;;  %v25_v3 = vld [vmem:[%s871_s1 + $0x10] sm:$0xff]  ;;  %v17_v4 = vld [vmem:[%s872_s0] sm:$0xff]  ;;  %v28_v6 = vld [vmem:[%s871_s1 + $0x28] sm:$0x3] }
   0x3   :  { %v19_v5 = vld [vmem:[%s872_s0 + $0x10] sm:$0xff]  ;;  %649 = vmatpush3.xpose.msra.mxu0 %v24_v0  ;;  %656 = vmatpush3.xpose.msra.mxu1 %v26_v1  ;;  %v18_v7 = vld [vmem:[%s872_s0 + $0x8] sm:$0x3]  ;;  %v20_v8 = vld [vmem:[%s872_s0 + $0x18] sm:$0x3] }
   0x4   :  { %650 = vmatprep.subr.mxu0 %v23_v2  ;;  %657 = vmatprep.subr.mxu1 %v25_v3  ;;  %v21_v9 = vld [vmem:[%s872_s0 + $0x20] sm:$0xff]  ;;  %v22_v11 = vld [vmem:[%s872_s0 + $0x28] sm:$0x3]  ;;  %v32_v56 = vld [vmem:[%s873_s2 + $0x18] sm:$0x3] }
   0x5   :  { %652 = vmatprep.mubr.f32.mxu0 %v17_v4  ;;  %659 = vmatprep.mubr.f32.mxu1 %v19_v5  ;;  %v27_v10 = vld [vmem:[%s871_s1 + $0x20] sm:$0xff]  ;;  %v30_v54 = vld [vmem:[%s873_s2 + $0x8] sm:$0x3]  ;;  %v715_v5 = vmov 0.0  }
   0x6   :  { %v29_v55 = vld [vmem:[%s873_s2] sm:$0xff]  ;;  %v34_v57 = vld [vmem:[%s873_s2 + $0x28] sm:$0x3] }
   0x7   :  { %651 = vmatpush3.xpose.msra.mxu0 %v23_v2  ;;  %658 = vmatpush3.xpose.msra.mxu1 %v25_v3  ;;  %v33_v58 = vld [vmem:[%s873_s2 + $0x20] sm:$0xff]  ;;  %v329_v1 = vld [vmem:[%s874_s3 + $0x8] sm:$0x3]  ;;  %v330_v3 = vld [vmem:[%s874_s3 + $0x10] sm:$0xff] }
   0x8   :  { %662 = vmatprep.subr.mxu0 %v28_v6  ;;  %669 = vmatprep.subr.msk.mxu1 %vm358_vm2, %v30_v54  ;;  %v328_v0 = vld [vmem:[%s874_s3] sm:$0xff]  ;;  %vm335_vm4 = vcmp.ge.u32.totalorder %v329_v1, 858993459  ;;  %vm336_vm5 = vcmp.ge.u32.totalorder %v330_v3, 858993459 }
   0x9   :  { %vm334_vm3 = vcmp.ge.u32.totalorder %v328_v0, 858993459 }
   0xa   :  { %653 = vmatmul.mubr.f32.vlgmr.msra.gmra.mxu0 %v18_v7  ;;  %660 = vmatmul.mubr.f32.vlgmr.msra.gmra.mxu1 %v20_v8  ;;  %v331_v8 = vld [vmem:[%s874_s3 + $0x18] sm:$0x3] }
   0xb   :  { %663 = vmatpush3.xpose.msra.mxu0 %v28_v6  ;;  %666 = vmatprep.mubr.f32.mxu0 %v21_v9  ;;  %v340_v6 = vsel %vm334_vm3, 1.25, %v715_v5  ;;  %vm337_vm6 = vcmp.ge.u32.totalorder %v331_v8, 858993459 }
   0xc   :  { %664 = vmatprep.subr.mxu0 %v27_v10  ;;  %670 = vmatpush3.msk.msra.mxu1 %vm358_vm2, %v30_v54 }
   0xd   :  { %671 = vmatprep.subr.mxu1 %v29_v55 }
   0xe   :  { %672 = vmatpush3.msra.mxu1 %v29_v55 }
   0xf   :  { %665 = vmatpush3.xpose.msra.mxu0 %v27_v10  ;;  %676 = vmatprep.subr.msk.mxu1 %vm358_vm2, %v32_v56 }
  0x10   :  { %683 = vmatprep.subr.msk.mxu0 %vm358_vm2, %v34_v57 }
  0x12   :  { %667 = vmatmul.mubr.f32.vlgmr.msra.gmra.mxu0 %v22_v11  ;;  %v341_v11 = vsel %vm335_vm4, 1.25, %v715_v5 }
  0x13   :  { %684 = vmatpush3.msk.msra.mxu0 %vm358_vm2, %v34_v57 }
  0x14   :  { %685 = vmatprep.subr.mxu0 %v33_v58 }
  0x15   :  { %686 = vmatpush3.msra.mxu0 %v33_v58 }
  0xca   :  { %v654_v12 = vpop.f32.mrf.mxu0  ;;  %v661_v13 = vpop.f32.mrf.mxu1 }
  0xcb   :  { %v265_v18 = vsel %vm264_vm1, %v654_v12, -inf  ;;  %v271_v21 = vsel %vm264_vm1, %v661_v13, -inf }
  0xcc   :  { %v101_v14 = vpop.f32.mrf.mxu0  ;;  %v176_v15 = vpop.f32.mrf.mxu1 }
  0xcd   :  { %v268_v16 = vsel %vm260_vm0, %v176_v15, -inf  ;;  %v261_v17 = vsel %vm260_vm0, %v101_v14, -inf }
  0xce   :  { %269 = vmax.xlane.f32.xlu1 %v268_v16  ;;  %262 = vmax.xlane.f32.xlu0 %v261_v17 }
  0xd2   :  { %266 = vmax.xlane.f32.xlu0 %v265_v18  ;;  %v668_v19 = vpop.f32.mrf.mxu0  ;;  %v333_v18 = vld [vmem:[%s874_s3 + $0x28] sm:$0x3] }
  0xd3   :  { %v277_v23 = vsel %vm264_vm1, %v668_v19, -inf  ;;  %vm339_vm8 = vcmp.ge.u32.totalorder %v333_v18, 858993459 }
  0xd4   :  { %v251_v20 = vpop.f32.mrf.mxu0 }
  0xd5   :  { %v274_v22 = vsel %vm260_vm0, %v251_v20, -inf }
  0xd6   :  { %272 = vmax.xlane.f32.xlu0 %v271_v21  ;;  %275 = vmax.xlane.f32.xlu1 %v274_v22  ;;  %v343_v22 = vsel %vm337_vm6, 1.25, %v715_v5 }
  0xda   :  { %278 = vmax.xlane.f32.xlu1 %v277_v23 }
 0x157   :  { %v270_v24 = vpop.xlane.xlu1 %269  ;;  %v263_v25 = vpop.xlane.xlu0 %262 }
 0x158   :  { %v282_v26 = vsub.f32 %v176_v15, %v270_v24  ;;  %v280_v27 = vsub.f32 %v101_v14, %v263_v25  ;;  %v342_v15 = vsel %vm336_vm5, 1.25, %v715_v5 }
 0x15a   :  { %v286_v28 = vmul.f32 1.442695, %v280_v27  ;;  %v290_v29 = vmul.f32 1.442695, %v282_v26 }
 0x15b   :  { %v267_v30 = vpop.xlane.xlu0 %266 }
 0x15c   :  { %v281_v31 = vsub.f32 %v654_v12, %v267_v30  ;;  %691 = vpow2.f32 %v286_v28  ;;  %v332_v12 = vld [vmem:[%s874_s3 + $0x20] sm:$0xff]  ;;  %v345_v30 = vsel %vm339_vm8, 1.25, %v715_v5 }
 0x15d   :  { %693 = vpow2.f32 %v290_v29  ;;  %vm338_vm7 = vcmp.ge.u32.totalorder %v332_v12, 858993459 }
 0x15e   :  { %v288_v32 = vmul.f32 1.442695, %v281_v31  ;;  %v344_v25 = vsel %vm338_vm7, 1.25, %v715_v5 }
 0x15f   :  { %v273_v33 = vpop.xlane.xlu0 %272  ;;  %v276_v34 = vpop.xlane.xlu1 %275 }
 0x160   :  { %695 = vpow2.f32 %v288_v32  ;;  %v283_v35 = vsub.f32 %v661_v13, %v273_v33  ;;  %v284_v36 = vsub.f32 %v251_v20, %v276_v34  ;;  %v31_v20 = vld [vmem:[%s873_s2 + $0x10] sm:$0xff] }
 0x162   :  { %v292_v37 = vmul.f32 1.442695, %v283_v35  ;;  %v294_v38 = vmul.f32 1.442695, %v284_v36 }
 0x163   :  { %v279_v39 = vpop.xlane.xlu1 %278 }
 0x164   :  { %697 = vpow2.f32 %v292_v37  ;;  %v285_v40 = vsub.f32 %v668_v19, %v279_v39 }
 0x165   :  { %699 = vpow2.f32 %v294_v38 }
 0x166   :  { %v296_v41 = vmul.f32 1.442695, %v285_v40 }
 0x168   :  { %701 = vpow2.f32 %v296_v41 }
 0x169   :  { %v692_v42 = vpop.eup %691 }
 0x16a   :  { %v298_v43 = vsel %vm260_vm0, %v692_v42, 0.0  ;;  %v784_v44 = vpop.eup %693 }
 0x16b   :  { %299 = vadd.xlane.f32.xlu0 %v298_v43  ;;  %v304_v47 = vsel %vm260_vm0, %v784_v44, 0.0 }
 0x16d   :  { %v696_v45 = vpop.eup %695 }
 0x16e   :  { %v301_v46 = vsel %vm264_vm1, %v696_v45, 0.0 }
 0x16f   :  { %302 = vadd.xlane.f32.xlu1 %v301_v46  ;;  %305 = vadd.xlane.f32.xlu0 %v304_v47 }
 0x171   :  { %v789_v48 = vpop.eup %697 }
 0x172   :  { %v791_v49 = vpop.eup %699  ;;  %v307_v50 = vsel %vm264_vm1, %v789_v48, 0.0 }
 0x173   :  { %v310_v51 = vsel %vm260_vm0, %v791_v49, 0.0  ;;  %308 = vadd.xlane.f32.xlu0 %v307_v50 }
 0x174   :  { %311 = vadd.xlane.f32.xlu1 %v310_v51 }
 0x175   :  { %v797_v52 = vpop.eup %701 }
 0x176   :  { %v313_v53 = vsel %vm264_vm1, %v797_v52, 0.0 }
 0x178   :  { %314 = vadd.xlane.f32.xlu1 %v313_v53 }
 0x1f4   :  { %v300_v59 = vpop.xlane.xlu0 %299 }
 0x1f5   :  { %703 = vrcp.f32 %v300_v59 }
 0x1f8   :  { %v303_v60 = vpop.xlane.xlu1 %302  ;;  %v306_v61 = vpop.xlane.xlu0 %305 }
 0x1f9   :  { %705 = vrcp.f32 %v303_v60 }
 0x1fa   :  { %707 = vrcp.f32 %v306_v61 }
 0x1fc   :  { %v309_v62 = vpop.xlane.xlu0 %308 }
 0x1fd   :  { %v312_v63 = vpop.xlane.xlu1 %311  ;;  %709 = vrcp.f32 %v309_v62 }
 0x1fe   :  { %711 = vrcp.f32 %v312_v63 }
 0x201   :  { %v315_v2 = vpop.xlane.xlu1 %314 }
 0x202   :  { %713 = vrcp.f32 %v315_v2  ;;  %v704_v4 = vpop.eup %703 }
 0x203   :  { %v317_v7 = vmul.f32 %v704_v4, %v692_v42 }
 0x205   :  { %v346_v10 = vmul.f32 %v340_v6, %v317_v7 }
 0x206   :  { %v706_v9 = vpop.eup %705 }
 0x207   :  { %v708_v13 = vpop.eup %707  ;;  %v319_v14 = vmul.f32 %v706_v9, %v696_v45  ;;  %673 = vmatprep.mubr.msk.f32.mxu1 %vm260_vm0, %v346_v10 }
 0x208   :  { %v321_v16 = vmul.f32 %v708_v13, %v784_v44 }
 0x209   :  { %v347_v17 = vmul.f32 %v341_v11, %v319_v14 }
 0x20a   :  { %v348_v19 = vmul.f32 %v342_v15, %v321_v16  ;;  %v710_v21 = vpop.eup %709 }
 0x20b   :  { %674 = vmatmul.mubr.msk.f32.vlgmr.msra.gmra.mxu1 %vm260_vm0, %v347_v17  ;;  %v712_v23 = vpop.eup %711  ;;  %v323_v24 = vmul.f32 %v710_v21, %v789_v48 }
 0x20c   :  { %677 = vmatpush3.msk.msra.mxu1 %vm358_vm2, %v32_v56  ;;  %680 = vmatprep.mubr.msk.f32.mxu1 %vm260_vm0, %v348_v19  ;;  %v325_v26 = vmul.f32 %v712_v23, %v791_v49 }
 0x20d   :  { %678 = vmatprep.subr.mxu1 %v31_v20  ;;  %v349_v27 = vmul.f32 %v343_v22, %v323_v24 }
 0x20e   :  { %679 = vmatpush3.msra.mxu1 %v31_v20  ;;  %v350_v29 = vmul.f32 %v344_v25, %v325_v26 }
 0x20f   :  { %v714_v28 = vpop.eup %713  ;;  %681 = vmatmul.mubr.msk.f32.vlgmr.msra.gmra.mxu1 %vm260_vm0, %v349_v27 }
 0x210   :  { %v327_v31 = vmul.f32 %v714_v28, %v797_v52  ;;  %687 = vmatprep.mubr.msk.f32.mxu0 %vm260_vm0, %v350_v29 }
 0x212   :  { %v351_v32 = vmul.f32 %v345_v30, %v327_v31 }
 0x214   :  { %688 = vmatmul.mubr.msk.f32.vlgmr.msra.gmra.mxu0 %vm260_vm0, %v351_v32 }
 0x2cb   :  { %v675_v33 = vpop.f32.mrf.mxu1 }
 0x2cc   :  { %606 = vst [vmem:[%s875_s4 + $0x8] sm:$0x3] %v675_v33 }
 0x2cd   :  { %v428_v34 = vpop.f32.mrf.mxu1 }
 0x2ce   :  { %605 = vst [vmem:[%s875_s4] sm:$0xff] %v428_v34 }
 0x2cf   :  { %v682_v35 = vpop.f32.mrf.mxu1 }
 0x2d0   :  { %608 = vst [vmem:[%s875_s4 + $0x18] sm:$0x3] %v682_v35 }
 0x2d1   :  { %v512_v36 = vpop.f32.mrf.mxu1 }
 0x2d2   :  { %607 = vst [vmem:[%s875_s4 + $0x10] sm:$0xff] %v512_v36 }
 0x2d4   :  { %v689_v37 = vpop.f32.mrf.mxu0 }
 0x2d5   :  { %610 = vst [vmem:[%s875_s4 + $0x28] sm:$0x3] %v689_v37 }
 0x2d6   :  { %v596_v38 = vpop.f32.mrf.mxu0 }
 0x2d7   :  { %609 = vst [vmem:[%s875_s4 + $0x20] sm:$0xff] %v596_v38 }

</bundles_post_ra>
